<compile_context>
chip_gen: v7x
topology: tpu7x:2x2x1
jax: 0.10.0
libtpu: 0.0.40
codegen_flags: <defaults>
</compile_context>

<pallas_src>
import functools

import jax
import jax.numpy as jnp
from jax.experimental import pallas as pl
from jax.experimental.pallas import tpu as pltpu


def _round_up(x, m):
    return (x + m - 1) // m * m


_INV_SQRT2 = 0.7071067811865476
_TANH_C0 = 0.7978845608028654   # sqrt(2/pi)
_TANH_C1 = 0.044715


def _mlp_kernel(x_ref, w1_ref, b1_ref, w2_ref, b2_ref, o_ref, acc_ref, *,
                approx_gelu):
    hk = pl.program_id(1)

    @pl.when(hk == 0)
    def _():
        acc_ref[...] = jnp.zeros_like(acc_ref)

    # fc1 chunk: (tm, Cin) @ (Cin, tk) -- bf16 operands, f32 accumulation.
    # x arrives in its original dtype; cast to bf16 in-kernel (VPU, cheap).
    x_bf16 = x_ref[...].astype(jnp.bfloat16)
    h = jnp.dot(x_bf16, w1_ref[...], preferred_element_type=jnp.float32)
    h = h + b1_ref[...]                                   # f32 bias (chunk slice)

    if approx_gelu:
        # tanh approximation (goes to the EUP slot; opt-in only).
        h = 0.5 * h * (1.0 + jnp.tanh(_TANH_C0 * (h + _TANH_C1 * h * h * h)))
    else:
        # exact erf GELU (matches torch.nn.GELU default).
        h = 0.5 * h * (1.0 + jax.lax.erf(h * _INV_SQRT2))

    # fc2 partial product: (tm, tk) @ (tk, Cout), accumulated in f32 scratch.
    acc_ref[...] += jnp.dot(h.astype(jnp.bfloat16), w2_ref[...],
                            preferred_element_type=jnp.float32)

    @pl.when(hk == pl.num_programs(1) - 1)
    def _():
        # b2 folded in exactly once, at the final store.
        o_ref[...] = (acc_ref[...] + b2_ref[...]).astype(o_ref.dtype)


@functools.partial(jax.jit, static_argnames=("tm", "tk", "approx_gelu"))
def mlp_pallas(x2d, w1, b1, w2, b2, *, tm=512, tk=512, approx_gelu=False):
    """x2d: (M, C_in).  w1: (C_in, H), b1: (H,), w2: (H, C_out), b2: (C_out,)."""
    M, C_in = x2d.shape
    H = w1.shape[1]
    C_out = w2.shape[1]
    out_dtype = x2d.dtype

    LANE = 128       # minimum lane alignment (v5e-safe)
    H_ALIGN = 256    # H / tk alignment for v6e/v7x 256x256 MXUs (harmless on v5e)

    Cip = _round_up(C_in, LANE)
    Cop = _round_up(C_out, LANE)
    Hp_full = _round_up(H, H_ALIGN)

    x_item = jnp.dtype(x2d.dtype).itemsize
    out_item = jnp.dtype(out_dtype).itemsize

    # ---- token tile: don't tile past the problem, keep sublane-friendly ----
    tm_eff = min(tm, _round_up(M, 16))
    tm_eff = max(16, _round_up(tm_eff, 16))

    # Conservative VMEM estimate for a (tm, tk) configuration.  Every
    # BlockSpec counted at 2x (double-buffered) even when its index is
    # constant; includes the f32 accumulator and the (tm, tk) GELU
    # intermediate.  Budget kept under v7x's 64 MiB physical VMEM.
    def _vmem_est(tm_, tk_):
        return (2 * tm_ * Cip * x_item        # x tile
                + 2 * Cip * tk_ * 2           # w1 chunk (bf16)
                + 2 * tk_ * Cop * 2           # w2 chunk (bf16)
                + 2 * tk_ * 4 + 2 * Cop * 4   # biases (f32)
                + 2 * tm_ * Cop * out_item    # out tile
                + tm_ * Cop * 4               # f32 accumulator scratch
                + 2 * tm_ * tk_ * 4)          # f32/bf16 GELU intermediate headroom

    VMEM_BUDGET = 40 * 1024 * 1024

    if _vmem_est(tm_eff, Hp_full) <= VMEM_BUDGET:
        # Resident-weight path: single H chunk -> w1/w2 block indices constant
        # across the whole grid -> each weight is DMA'd exactly once.
        tk_eff = Hp_full
        Hp = Hp_full
    else:
        # Streamed path: 256-aligned H chunks; shrink tm, then tk, if needed.
        tk_eff = max(256, min(_round_up(tk, 256), Hp_full))
        while _vmem_est(tm_eff, tk_eff) > VMEM_BUDGET and tm_eff > 128:
            tm_eff = max(16, _round_up(tm_eff // 2, 16))
        while _vmem_est(tm_eff, tk_eff) > VMEM_BUDGET and tk_eff > 256:
            tk_eff //= 2
        Hp = _round_up(H, tk_eff)

    # ---- pad + cast the (small, static) parameters; zero padding is exact ----
    w1p = jnp.pad(w1, ((0, Cip - C_in), (0, Hp - H))).astype(jnp.bfloat16)
    b1p = jnp.pad(b1, (0, Hp - H)).astype(jnp.float32).reshape(1, Hp)
    w2p = jnp.pad(w2, ((0, Hp - H), (0, Cop - C_out))).astype(jnp.bfloat16)
    b2p = jnp.pad(b2, (0, Cop - C_out)).astype(jnp.float32).reshape(1, Cop)

    # x: pad only the contraction (feature) dim if it needs lane alignment.
    # No token-dim pad (ragged last tile) and no wrapper-side dtype cast.
    xp = x2d if Cip == C_in else jnp.pad(x2d, ((0, 0), (0, Cip - C_in)))

    grid = (pl.cdiv(M, tm_eff), Hp // tk_eff)

    cost = pl.CostEstimate(
        flops=2 * M * H * (C_in + C_out),
        transcendentals=M * H,
        bytes_accessed=(M * C_in * x_item + C_in * H * 2 + H * C_out * 2
                        + M * C_out * out_item),
    )

    out = pl.pallas_call(
        functools.partial(_mlp_kernel, approx_gelu=approx_gelu),
        out_shape=jax.ShapeDtypeStruct((M, Cop), out_dtype),
        grid_spec=pltpu.PrefetchScalarGridSpec(
            num_scalar_prefetch=0,
            grid=grid,
            in_specs=[
                pl.BlockSpec((tm_eff, Cip), lambda i, k: (i, 0)),   # x tile (constant over k)
                pl.BlockSpec((Cip, tk_eff), lambda i, k: (0, k)),   # w1 chunk (resident if 1 chunk)
                pl.BlockSpec((1, tk_eff), lambda i, k: (0, k)),     # b1 chunk
                pl.BlockSpec((tk_eff, Cop), lambda i, k: (k, 0)),   # w2 chunk (resident if 1 chunk)
                pl.BlockSpec((1, Cop), lambda i, k: (0, 0)),        # b2 (tiny, resident)
            ],
            out_specs=pl.BlockSpec((tm_eff, Cop), lambda i, k: (i, 0)),
            scratch_shapes=[pltpu.VMEM((tm_eff, Cop), jnp.float32)],  # fc2 accumulator
        ),
        compiler_params=pltpu.CompilerParams(
            dimension_semantics=("parallel", "arbitrary"),
            vmem_limit_bytes=48 * 1024 * 1024,
        ),
        cost_estimate=cost,
    )(xp, w1p, b1p, w2p, b2p)

    return out[:, :C_out]


def mlp_forward(x, w1, b1, w2, b2, *, tm=512, tk=512, approx_gelu=False):
    """x: (B, N, C_in) -> (B, N, C_out).  Dropout(p=0.0) is identity -> no-op."""
    B, N, C_in = x.shape
    C_out = w2.shape[1]
    y2d = mlp_pallas(x.reshape(B * N, C_in), w1, b1, w2, b2,
                     tm=tm, tk=tk, approx_gelu=approx_gelu)
    return y2d.reshape(B, N, C_out)


def _reference(x, w1, b1, w2, b2):
    h = x @ w1 + b1
    h = 0.5 * h * (1.0 + jax.lax.erf(h / jnp.sqrt(2.0)))
    return h @ w2 + b2


if __name__ == "__main__":
    key = jax.random.PRNGKey(0)
    B, N = 2, 8                    # batch, sequence
    C_in, Hd, C_out = 32, 64, 32   # in_features, hidden_features, out_features

    kx, k1, k2, k3, k4 = jax.random.split(key, 5)
    x = jax.random.normal(kx, (B, N, C_in), dtype=jnp.float32)
    # deterministic parameter init (Linear-like scale)
    w1 = jax.random.normal(k1, (C_in, Hd), dtype=jnp.float32) * (1.0 / jnp.sqrt(C_in))
    b1 = jax.random.normal(k2, (Hd,), dtype=jnp.float32) * 0.01
    w2 = jax.random.normal(k3, (Hd, C_out), dtype=jnp.float32) * (1.0 / jnp.sqrt(Hd))
    b2 = jax.random.normal(k4, (C_out,), dtype=jnp.float32) * 0.01

    y = mlp_forward(x, w1, b1, w2, b2)
    y = jax.block_until_ready(y)

    y_ref = _reference(x, w1, b1, w2, b2)
    assert y.shape == (B, N, C_out)
    # bf16 MXU inputs with f32 accumulation -> ~1e-2 level error vs f32 reference.
    assert jnp.allclose(y, y_ref, atol=5e-2, rtol=5e-2), "mismatch vs reference"

    print("KERNEL_OK")
</pallas_src>

<mosaic_0001>
module attributes {stable_mosaic.version = 11 : i64} {
  func.func @_mlp_kernel(%arg0: i32, %arg1: i32, %arg2: memref<16x128xf32, #tpu.memory_space<vmem>>, %arg3: memref<128x256xbf16, #tpu.memory_space<vmem>>, %arg4: memref<1x256xf32, #tpu.memory_space<vmem>>, %arg5: memref<256x128xbf16, #tpu.memory_space<vmem>>, %arg6: memref<1x128xf32, #tpu.memory_space<vmem>>, %arg7: memref<16x128xf32, #tpu.memory_space<vmem>>, %arg8: memref<16x128xf32, #tpu.memory_space<vmem>>) attributes {dimension_semantics = [#tpu.dimension_semantics<parallel>, #tpu.dimension_semantics<arbitrary>], iteration_bounds = array<i64: 1, 1>, scalar_prefetch = 0 : i64, scratch_operands = 1 : i64, tpu.core_type = #tpu.core_type<tc>, window_params = [{transform_indices = @transform_0, window_bounds = array<i64: 16, 128>}, {transform_indices = @transform_1, window_bounds = array<i64: 128, 256>}, {transform_indices = @transform_2, window_bounds = array<i64: 1, 256>}, {transform_indices = @transform_3, window_bounds = array<i64: 256, 128>}, {pipeline_mode = #tpu.pipeline_mode<synchronous>, transform_indices = @transform_4, window_bounds = array<i64: 1, 128>}, {transform_indices = @transform_5, window_bounds = array<i64: 16, 128>}]} {
    %c0_i32 = arith.constant 0 : i32
    %0 = arith.cmpi eq, %arg1, %c0_i32 : i32
    %1 = arith.extui %0 : i1 to i32
    %c0_i32_0 = arith.constant 0 : i32
    %2 = arith.cmpi ne, %1, %c0_i32_0 : i32
    scf.if %2 {
      %cst_18 = arith.constant 0.000000e+00 : f32
      %27 = vector.broadcast %cst_18 : f32 to vector<16x128xf32>
      %c0_19 = arith.constant 0 : index
      %c0_20 = arith.constant 0 : index
      %28 = vector.load %arg8[%c0_19, %c0_20] : memref<16x128xf32, #tpu.memory_space<vmem>>, vector<16x128xf32>
      tpu.vector_store %arg8[%c0_19, %c0_20], %27 {strides = array<i32>} : memref<16x128xf32, #tpu.memory_space<vmem>>, vector<16x128xf32>,
    } else {
    }
    %c0 = arith.constant 0 : index
    %c0_1 = arith.constant 0 : index
    %3 = vector.load %arg2[%c0, %c0_1] : memref<16x128xf32, #tpu.memory_space<vmem>>, vector<16x128xf32>
    %4 = arith.truncf %3 : vector<16x128xf32> to vector<16x128xbf16>
    %c0_2 = arith.constant 0 : index
    %c0_3 = arith.constant 0 : index
    %5 = vector.load %arg3[%c0_2, %c0_3] : memref<128x256xbf16, #tpu.memory_space<vmem>>, vector<128x256xbf16>
    %cst = arith.constant dense<0.000000e+00> : vector<16x256xf32>
    %6 = tpu.matmul %4, %5, %cst {dimension_numbers = #tpu.dot_dimension_numbers<[1], [0], [0], [1], [0, 0, 1, 1], [], []>} : vector<16x128xbf16>, vector<128x256xbf16>, vector<16x256xf32> -> vector<16x256xf32>
    %c0_4 = arith.constant 0 : index
    %c0_5 = arith.constant 0 : index
    %7 = vector.load %arg4[%c0_4, %c0_5] : memref<1x256xf32, #tpu.memory_space<vmem>>, vector<1x256xf32>
    %8 = vector.broadcast %7 : vector<1x256xf32> to vector<16x256xf32>
    %9 = arith.addf %6, %8 : vector<16x256xf32>
    %cst_6 = arith.constant 5.000000e-01 : f32
    %10 = vector.broadcast %cst_6 : f32 to vector<16x256xf32>
    %11 = arith.mulf %10, %9 : vector<16x256xf32>
    %cst_7 = arith.constant 0.707106769 : f32
    %12 = vector.broadcast %cst_7 : f32 to vector<16x256xf32>
    %13 = arith.mulf %9, %12 : vector<16x256xf32>
    %14 = math.erf %13 : vector<16x256xf32>
    %cst_8 = arith.constant 1.000000e+00 : f32
    %15 = vector.broadcast %cst_8 : f32 to vector<16x256xf32>
    %16 = arith.addf %15, %14 : vector<16x256xf32>
    %17 = arith.mulf %11, %16 : vector<16x256xf32>
    %c0_9 = arith.constant 0 : index
    %c0_10 = arith.constant 0 : index
    %18 = vector.load %arg8[%c0_9, %c0_10] : memref<16x128xf32, #tpu.memory_space<vmem>>, vector<16x128xf32>
    %19 = arith.truncf %17 : vector<16x256xf32> to vector<16x256xbf16>
    %c0_11 = arith.constant 0 : index
    %c0_12 = arith.constant 0 : index
    %20 = vector.load %arg5[%c0_11, %c0_12] : memref<256x128xbf16, #tpu.memory_space<vmem>>, vector<256x128xbf16>
    %cst_13 = arith.constant dense<0.000000e+00> : vector<16x128xf32>
    %21 = tpu.matmul %19, %20, %cst_13 {dimension_numbers = #tpu.dot_dimension_numbers<[1], [0], [0], [1], [0, 0, 1, 1], [], []>} : vector<16x256xbf16>, vector<256x128xbf16>, vector<16x128xf32> -> vector<16x128xf32>
    %22 = arith.addf %18, %21 : vector<16x128xf32>
    %c0_14 = arith.constant 0 : index
    %c0_15 = arith.constant 0 : index
    %23 = vector.load %arg8[%c0_14, %c0_15] : memref<16x128xf32, #tpu.memory_space<vmem>>, vector<16x128xf32>
    tpu.vector_store %arg8[%c0_14, %c0_15], %22 {strides = array<i32>} : memref<16x128xf32, #tpu.memory_space<vmem>>, vector<16x128xf32>,
    %c0_i32_16 = arith.constant 0 : i32
    %24 = arith.cmpi eq, %arg1, %c0_i32_16 : i32
    %25 = arith.extui %24 : i1 to i32
    %c0_i32_17 = arith.constant 0 : i32
    %26 = arith.cmpi ne, %25, %c0_i32_17 : i32
    scf.if %26 {
      %c0_18 = arith.constant 0 : index
      %c0_19 = arith.constant 0 : index
      %27 = vector.load %arg8[%c0_18, %c0_19] : memref<16x128xf32, #tpu.memory_space<vmem>>, vector<16x128xf32>
      %c0_20 = arith.constant 0 : index
      %c0_21 = arith.constant 0 : index
      %28 = vector.load %arg6[%c0_20, %c0_21] : memref<1x128xf32, #tpu.memory_space<vmem>>, vector<1x128xf32>
      %29 = vector.broadcast %28 : vector<1x128xf32> to vector<16x128xf32>
      %30 = arith.addf %27, %29 : vector<16x128xf32>
      %c0_22 = arith.constant 0 : index
      %c0_23 = arith.constant 0 : index
      %31 = vector.load %arg7[%c0_22, %c0_23] : memref<16x128xf32, #tpu.memory_space<vmem>>, vector<16x128xf32>
      tpu.vector_store %arg7[%c0_22, %c0_23], %30 {strides = array<i32>} : memref<16x128xf32, #tpu.memory_space<vmem>>, vector<16x128xf32>,
    } else {
    }
    return
  }
  func.func @transform_0(%arg0: i32, %arg1: i32) -> (i32, i32) {
    %c0_i32 = arith.constant 0 : i32
    %c0_i32_0 = arith.constant 0 : i32
    return %arg0, %c0_i32 : i32, i32
  }
  func.func @transform_1(%arg0: i32, %arg1: i32) -> (i32, i32) {
    %c0_i32 = arith.constant 0 : i32
    %c0_i32_0 = arith.constant 0 : i32
    return %c0_i32, %arg1 : i32, i32
  }
  func.func @transform_2(%arg0: i32, %arg1: i32) -> (i32, i32) {
    %c0_i32 = arith.constant 0 : i32
    %c0_i32_0 = arith.constant 0 : i32
    return %c0_i32, %arg1 : i32, i32
  }
  func.func @transform_3(%arg0: i32, %arg1: i32) -> (i32, i32) {
    %c0_i32 = arith.constant 0 : i32
    %c0_i32_0 = arith.constant 0 : i32
    return %arg1, %c0_i32 : i32, i32
  }
  func.func @transform_4(%arg0: i32, %arg1: i32) -> (i32, i32) {
    %c0_i32 = arith.constant 0 : i32
    %c0_i32_0 = arith.constant 0 : i32
    %c0_i32_1 = arith.constant 0 : i32
    return %c0_i32, %c0_i32_0 : i32, i32
  }
  func.func @transform_5(%arg0: i32, %arg1: i32) -> (i32, i32) {
    %c0_i32 = arith.constant 0 : i32
    %c0_i32_0 = arith.constant 0 : i32
    return %arg0, %c0_i32 : i32, i32
  }
}

</mosaic_0001>

<bundles_post_ra>
// kernel: mlp_pallas.1
= control target key start
LH: loop header
LB: loop body
LE: loop exit
PB: predicated region body
PF: predicated region fallthrough
CT: control target
= control target key end

     0   :  { %v542_v2 = vmov 0   ;;  %s696_s0 = inlined_call_operand.vmem [shape: f32[16,128], index: 0, kind: input, shape index: {}]   ;;  %s697_s1 = inlined_call_operand.vmem [shape: bf16[128,256], index: 1, kind: input, shape index: {}]   ;;  %s698_s2 = inlined_call_operand.vmem [shape: f32[1,256], index: 2, kind: input, shape index: {}]   ;;  %s699_s3 = inlined_call_operand.vmem [shape: bf16[256,128], index: 3, kind: input, shape index: {}]   ;;  %s700_s4 = inlined_call_operand.vmem [shape: f32[1,128], index: 4, kind: input, shape index: {}]   ;;  %s701_s5 = inlined_call_operand.hbm [shape: f32[16,128], index: 5, kind: output, shape index: {}]  }
   0x1   :  { %v470_v0 = vld [vmem:[%s697_s1 + $0x4] ss:$8 sps:$4 sm:$0xff]   ;;  %v472_v1 = vld [vmem:[%s697_s1] ss:$8 sps:$4 sm:$0xff]   ;;  %171 = vmatprep.mubr.bf16.mxu0 %v542_v2  ;;  %v473_v3 = vld [vmem:[%s697_s1 + $0x14] ss:$8 sps:$4 sm:$0xff]  }
   0x2   :  { %139 = vmatprep.subr.bf16.mxu0 %v470_v0  ;;  %v475_v4 = vld [vmem:[%s697_s1 + $0x10] ss:$8 sps:$4 sm:$0xff]   ;;  %v476_v5 = vld [vmem:[%s697_s1 + $0x24] ss:$8 sps:$4 sm:$0xff]   ;;  %v478_v6 = vld [vmem:[%s697_s1 + $0x20] ss:$8 sps:$4 sm:$0xff]  }
   0x3   :  { %140 = vmatpush1.bf16.msra.mxu0 %v472_v1  ;;  %v479_v7 = vld [vmem:[%s697_s1 + $0x34] ss:$8 sps:$4 sm:$0xff]   ;;  %v481_v8 = vld [vmem:[%s697_s1 + $0x30] ss:$8 sps:$4 sm:$0xff]   ;;  %v482_v9 = vld [vmem:[%s697_s1 + $0x44] ss:$8 sps:$4 sm:$0xff]  }
   0x4   :  { %141 = vmatprep.subr.bf16.mxu0 %v473_v3  ;;  %v494_v10 = vld [vmem:[%s699_s3 + $0x40] sm:$0xff]   ;;  %v496_v13 = vld [vmem:[%s699_s3 + $0x48] sm:$0xff]   ;;  %v485_v14 = vld [vmem:[%s697_s1 + $0x54] ss:$8 sps:$4 sm:$0xff]  }
   0x5   :  { %v484_v11 = vld [vmem:[%s697_s1 + $0x40] ss:$8 sps:$4 sm:$0xff]   ;;  %444 = vmatprep.subr.bf16.mxu1 %v494_v10  ;;  %v487_v16 = vld [vmem:[%s697_s1 + $0x50] ss:$8 sps:$4 sm:$0xff]   ;;  %v488_v17 = vld [vmem:[%s697_s1 + $0x64] ss:$8 sps:$4 sm:$0xff]  }
   0x6   :  { %v495_v12 = vld [vmem:[%s699_s3] sm:$0xff]   ;;  %v497_v15 = vld [vmem:[%s699_s3 + $0x8] sm:$0xff]  }
   0x7   :  { %142 = vmatpush1.bf16.msra.mxu0 %v475_v4  ;;  %445 = vmatpush3.bf16.msra.mxu1 %v495_v12  ;;  %v490_v18 = vld [vmem:[%s697_s1 + $0x60] ss:$8 sps:$4 sm:$0xff]  }
   0x8   :  { %143 = vmatprep.subr.bf16.mxu0 %v476_v5  ;;  %446 = vmatprep.subr.bf16.mxu1 %v496_v13 }
   0xb   :  { %144 = vmatpush1.bf16.msra.mxu0 %v478_v6  ;;  %447 = vmatpush3.bf16.msra.mxu1 %v497_v15 }
   0xc   :  { %145 = vmatprep.subr.bf16.mxu0 %v479_v7 }
   0xf   :  { %146 = vmatpush1.bf16.msra.mxu0 %v481_v8 }
  0x10   :  { %147 = vmatprep.subr.bf16.mxu0 %v482_v9 }
  0x13   :  { %148 = vmatpush1.bf16.msra.mxu0 %v484_v11 }
  0x14   :  { %149 = vmatprep.subr.bf16.mxu0 %v485_v14 }
  0x17   :  { %150 = vmatpush1.bf16.msra.mxu0 %v487_v16 }
  0x18   :  { %10 = vsyncpa [#allocation4], 0  ;;  %151 = vmatprep.subr.bf16.mxu0 %v488_v17  ;;  %v491_v19 = vld [vmem:[%s697_s1 + $0x74] ss:$8 sps:$4 sm:$0xff]   ;;  %v493_v20 = vld [vmem:[%s697_s1 + $0x70] ss:$8 sps:$4 sm:$0xff]   ;;  %v49_v36 = vlaneseq }
  0x19   :  { %v28_v21 = vld [vmem:[%s696_s0] sm:$0xff]  ;;  %v29_v22 = vld [vmem:[%s696_s0 + $0x8] sm:$0xff]  ;;  %v498_v24 = vld [vmem:[%s699_s3 + $0x50] sm:$0xff]   ;;  %s543_s11 = smov [#allocation3]  }
  0x1a   :  { %v30_v23 = vpack.c.bf16 %v29_v22, %v28_v21  ;;  %v499_v25 = vld [vmem:[%s699_s3 + $0x10] sm:$0xff]   ;;  %448 = vmatprep.subr.bf16.mxu1 %v498_v24  ;;  %v500_v26 = vld [vmem:[%s699_s3 + $0x58] sm:$0xff]   ;;  %v502_v28 = vld [vmem:[%s699_s3 + $0x60] sm:$0xff]   ;;  %v50_v37 = vshrl.u32 %v49_v36, 7  ;;  %s400_s12 = sshll.u32 %s543_s11, 4  ;;  %s401_s12 = int_to_ptr.vmem [resolvable:$true] %s400_s12 }
  0x1b   :  { %152 = vmatpush1.bf16.msra.mxu0 %v490_v18  ;;  %449 = vmatpush3.bf16.msra.mxu1 %v499_v25  ;;  %v501_v27 = vld [vmem:[%s699_s3 + $0x18] sm:$0xff]   ;;  %v503_v29 = vld [vmem:[%s699_s3 + $0x20] sm:$0xff]   ;;  %v504_v30 = vld [vmem:[%s699_s3 + $0x68] sm:$0xff]   ;;  %s518_s13 = scalar_lea.vmem %s401_s12, 256  ;;  %p523_p1 = scmp.lt.s32.totalorder %s401_s12, %s401_s12 }
  0x1c   :  { %153 = vmatprep.subr.bf16.mxu0 %v491_v19  ;;  %450 = vmatprep.subr.bf16.mxu1 %v500_v26  ;;  %v505_v31 = vld [vmem:[%s699_s3 + $0x28] sm:$0xff]   ;;  %v506_v32 = vld [vmem:[%s699_s3 + $0x70] sm:$0xff]   ;;  %v508_v34 = vld [vmem:[%s699_s3 + $0x78] sm:$0xff]   ;;  %v51_v38 = vsub.s32 0, %v50_v37  ;;  %v55_v40 = vsub.s32 1, %v50_v37  ;;  %p519_p0 = scmp.ne.s32.totalorder %s401_s12, %s518_s13  ;;  %p524_p2 = scmp.lt.s32.totalorder %s518_s13, %s518_s13 }
  0x1d   :  { %v507_v33 = vld [vmem:[%s699_s3 + $0x30] sm:$0xff]   ;;  %v509_v35 = vld [vmem:[%s699_s3 + $0x38] sm:$0xff]   ;;  %v47_v39 = vld [vmem:[%s698_s2] sm:$0x3] }
  0x1e   :  { %v52_v41 = vrot.slane %v47_v39, %v51_v38  ;;  %v56_v42 = vrot.slane %v47_v39, %v55_v40  ;;  %v443_v11 = vld [vmem:[%s700_s4] ss:$0 sm:$0xff]  ;;  %p525_p3 = por %p524_p2, %p523_p1 }
  0x1f   :  { %154 = vmatpush1.bf16.msra.mxu0 %v493_v20  ;;  %451 = vmatpush3.bf16.msra.mxu1 %v501_v27 }
  0x20   :  { %452 = vmatprep.subr.bf16.mxu1 %v502_v28  ;;  %p526_p4 = pnand %p525_p3, %p519_p0 }
  0x22   :  { %172 = vmatmul.mubr.bf16.vlgmr.msra.gmra.mrb[0].mxu0 %v30_v23 }
  0x23   :  { %453 = vmatpush3.bf16.msra.mxu1 %v503_v29 }
  0x24   :  { %454 = vmatprep.subr.bf16.mxu1 %v504_v30 }
  0x27   :  { %455 = vmatpush3.bf16.msra.mxu1 %v505_v31 }
  0x28   :  { %456 = vmatprep.subr.bf16.mxu1 %v506_v32 }
  0x2b   :  { %457 = vmatpush3.bf16.msra.mxu1 %v507_v33 }
  0x2c   :  { %458 = vmatprep.subr.bf16.mxu1 %v508_v34 }
  0x2f   :  { %459 = vmatpush3.bf16.msra.mxu1 %v509_v35 }
  0xf5   :  { %v173_v43 = vpop.f32.mrb[0].mxu0 }
  0xf6   :  { %v174_v44 = vadd.f32 %v173_v43, %v52_v41  ;;  %v175_v45 = vpop.f32.mrb[1].mxu0 }
  0xf7   :  { %v176_v46 = vadd.f32 %v175_v45, %v56_v42  ;;  %v177_v47 = vpop.f32.mrb[2].mxu0 }
  0xf8   :  { %v186_v48 = vmul.f32 0.70710677, %v174_v44  ;;  %v178_v49 = vadd.f32 %v177_v47, %v52_v41  ;;  %v179_v50 = vpop.f32.mrb[3].mxu0  ;;  %v182_v61 = vmul.f32 0.5, %v174_v44 }
  0xf9   :  { %v187_v51 = vmul.f32 0.70710677, %v176_v46  ;;  %v180_v52 = vadd.f32 %v179_v50, %v56_v42  ;;  %v183_v0 = vmul.f32 0.5, %v176_v46 }
  0xfa   :  { %510 = verf.f32 %v186_v48  ;;  %v188_v53 = vmul.f32 0.70710677, %v178_v49  ;;  %v184_v62 = vmul.f32 0.5, %v178_v49 }
  0xfb   :  { %512 = verf.f32 %v187_v51  ;;  %v189_v54 = vmul.f32 0.70710677, %v180_v52  ;;  %v185_v1 = vmul.f32 0.5, %v180_v52 }
  0xfc   :  { %514 = verf.f32 %v188_v53 }
  0xfd   :  { %516 = verf.f32 %v189_v54 }
 0x104   :  { %v511_v55 = vpop.eup %510 }
 0x105   :  { %v513_v56 = vpop.eup %512  ;;  %v194_v57 = vadd.f32 1.0, %v511_v55 }
 0x106   :  { %v515_v58 = vpop.eup %514  ;;  %v195_v59 = vadd.f32 1.0, %v513_v56 }
 0x107   :  { %v517_v60 = vpop.eup %516  ;;  %v196_v63 = vadd.f32 1.0, %v515_v58  ;;  %v198_v3 = vmul.f32 %v194_v57, %v182_v61 }
 0x108   :  { %v197_v2 = vadd.f32 1.0, %v517_v60  ;;  %v199_v5 = vmul.f32 %v195_v59, %v183_v0 }
 0x109   :  { %v200_v4 = vmul.f32 %v196_v63, %v184_v62 }
 0x10a   :  { %v201_v6 = vmul.f32 %v197_v2, %v185_v1 }
 0x10b   :  { %v204_v7 = vpack.c.bf16 %v200_v4, %v198_v3 }
 0x10c   :  { %v205_v8 = vpack.c.bf16 %v201_v6, %v199_v5 }
 0x10e   :  { %366 = vmatprep.mubr.bf16.mxu1 %v205_v8 }
 0x10f   :  { %367 = vmatmul.mubr.bf16.vlgmr.msra.gmra.mrb[0].mxu1 %v204_v7 }
 0x1e2   :  { %v460_v9 = vpop.f32.mrb[0].mxu1 }
 0x1e3   :  { %v461_v10 = vpop.f32.mrb[1].mxu1 }
 0x1e4   :  { %v462_v12 = vadd.f32 %v461_v10, %v460_v9  ;;  %v463_v13 = vpop.f32.mrb[2].mxu1 }
 0x1e5   :  { %v464_v14 = vpop.f32.mrb[3].mxu1 }
 0x1e6   :  { %v391_v15 = vadd.f32 %v462_v12, %v443_v11  ;;  %v465_v16 = vadd.f32 %v464_v14, %v463_v13 }
 0x1e8   :  { %393 = vst [vmem:[#allocation3] sm:$0xff] %v391_v15  ;;  %v392_v17 = vadd.f32 %v465_v16, %v443_v11 }
 0x1ea   :  { %394 = vst [vmem:[#allocation3 + $0x8] sm:$0xff] %v392_v17 }
 0x1eb   :  { %529 = shalt.err (!%p526_p4)
}
 0x1ec   :  { %s530_s15 = scalar_lea.hbm %s701_s5, 256 }
 0x1ed   :  { %p531_p5 = scmp.ne.s32.totalorder %s701_s5, %s530_s15  ;;  %p534_p6 = scmp.lt.u32.totalorder %s530_s15, %s701_s5 }
 0x1ef   :  { %p536_p7 = pnand %p534_p6, %p531_p5 }
 0x1f1   :  { %539 = shalt.err (!%p536_p7)
}
 0x1f2   :  { %s544_s18 = smov 128   ;;  %s545_s19 = smov 8  }
 0x1f3   :  { %406 = dma.vmem_to_hbm [thread:$0]  %s401_s12, 256, %s701_s5, [#allocation4], %s544_s18, %s544_s18, %s545_s19  }
 0x1f4   :  { %540 = dma.done.wait [#allocation4], 256  }
 0x1f5   :  { %541 = vsyncadd [#allocation4], 4294967040 }
 0x1f6   :  { %410 = vsyncpa [#allocation4], 1 }

</bundles_post_ra>
